<compile_context>
chip_gen: v6e
topology: v6e:2x2x1
jax: 0.10.0
libtpu: 0.0.40
codegen_flags: <defaults>
</compile_context>

<pallas_src>
import functools

import jax
import jax.numpy as jnp
from jax.experimental import pallas as pl
from jax.experimental.pallas import tpu as pltpu

LN_EPS = 1e-5


def _round_up(x, m):
    return (x + m - 1) // m * m


def _pad_to(a, shape):
    if tuple(a.shape) == tuple(shape):
        return a
    return jnp.pad(a, [(0, t - s) for s, t in zip(a.shape, shape)])


def _vmem_capacity_bytes():
    try:
        return int(pltpu.get_tpu_info().vmem_capacity_bytes)
    except Exception:
        return 64 * 1024 * 1024  # conservative fallback (v7x-sized)


def _select_tiling(rows, D_pad, F_pad, x_bytes, w_bytes, tile_budget):
    """Pick (row_tile, ffn_chunk, weights_resident) under a VMEM byte budget."""
    row_cap = max(8, min(512, _round_up(rows, 8)))
    cands = [rt for rt in (512, 256, 128, 64, 32, 16, 8) if rt <= row_cap]
    if not cands or cands[0] != row_cap:
        cands.insert(0, row_cap)
    small = 4 * 8 * (F_pad + 4 * D_pad)               # b1 / b2 / gamma / beta slack

    # Preferred: fully resident weights -> fetched once, no accumulator RMW, 1-D grid.
    for rt in cands:
        need = (2 * 2 * rt * D_pad * x_bytes          # x + out tiles, double-buffered
                + 2 * 2 * D_pad * F_pad * w_bytes     # W1 + W2 (counted double-buffered)
                + rt * F_pad * 4                      # relu(h) intermediate (f32)
                + small)
        if need <= tile_budget:
            return rt, F_pad, True

    # Fallback: stream W1/W2 in ffn chunks with an f32 accumulator (reduction axis).
    for rt in cands:
        for fc in (2048, 1024, 512, 256, 128):
            if fc > F_pad or F_pad % fc:
                continue
            need = (2 * 2 * rt * D_pad * x_bytes
                    + 2 * 2 * D_pad * fc * w_bytes    # W1 + W2 chunks, double-buffered
                    + rt * D_pad * 4                  # f32 accumulator
                    + rt * fc * 4                     # relu(h) chunk (f32)
                    + small)
            if need <= tile_budget:
                return rt, fc, False
    return cands[-1], 128, False


def _ln_epilogue(r, lnp, d_real, mask_lanes):
    """LayerNorm over the real model_dim channels of the f32 residual `r`.

    Padded channels of `r` are exactly zero (zero-padded x, zero-padded W2
    columns, zero-padded b2), so sums over the lane-padded width equal sums
    over the real channels.  lnp rows: 0 = b2 (already added), 1 = gamma, 2 = beta.
    """
    inv_d = 1.0 / float(d_real)
    mean = jnp.sum(r, axis=-1, keepdims=True) * inv_d
    cen = r - mean
    if mask_lanes:
        lane = jax.lax.broadcasted_iota(jnp.int32, r.shape, dimension=1)
        cen = jnp.where(lane < d_real, cen, 0.0)
    var = jnp.sum(cen * cen, axis=-1, keepdims=True) * inv_d
    norm = cen * jax.lax.rsqrt(var + LN_EPS)
    # gamma/beta are zero-padded, so padded output lanes stay 0 (cropped later).
    return norm * lnp[1:2, :].astype(jnp.float32) + lnp[2:3, :].astype(jnp.float32)


def ffn_ln_resident_kernel(x_ref, w1_ref, b1_ref, w2_ref, lnp_ref, o_ref,
                           *, d_real, mask_lanes):
    """1-D grid over row tiles; full W1/W2 stay resident in VMEM."""
    x = x_ref[...]
    mx = x.astype(w1_ref.dtype)                       # MXU operand dtype follows weights
    h = jnp.dot(mx, w1_ref[...], preferred_element_type=jnp.float32)
    h = jnp.maximum(h + b1_ref[...].astype(jnp.float32), 0.0)
    y = jnp.dot(h.astype(w2_ref.dtype), w2_ref[...],
                preferred_element_type=jnp.float32)
    r = x.astype(jnp.float32) + y + lnp_ref[0:1, :].astype(jnp.float32)
    o_ref[...] = _ln_epilogue(r, lnp_ref[...], d_real, mask_lanes).astype(o_ref.dtype)


def ffn_ln_chunked_kernel(x_ref, w1_ref, b1_ref, w2_ref, lnp_ref, o_ref, acc_ref,
                          *, d_real, mask_lanes):
    """2-D grid (row tiles, ffn chunks); axis 1 is a reduction over ffn_dim."""
    k = pl.program_id(1)

    @pl.when(k == 0)
    def _():
        acc_ref[...] = jnp.zeros_like(acc_ref)

    x = x_ref[...]
    mx = x.astype(w1_ref.dtype)
    h = jnp.dot(mx, w1_ref[...], preferred_element_type=jnp.float32)
    h = jnp.maximum(h + b1_ref[...].astype(jnp.float32), 0.0)
    acc_ref[...] += jnp.dot(h.astype(w2_ref.dtype), w2_ref[...],
                            preferred_element_type=jnp.float32)

    @pl.when(k == pl.num_programs(1) - 1)
    def _():
        r = x.astype(jnp.float32) + acc_ref[...] + lnp_ref[0:1, :].astype(jnp.float32)
        o_ref[...] = _ln_epilogue(r, lnp_ref[...], d_real, mask_lanes).astype(o_ref.dtype)


@functools.partial(jax.jit, static_argnames=("use_bf16_matmul",))
def positional_wise_ffn(x, w1, b1, w2, b2, gamma, beta, *, use_bf16_matmul=False):
    """x: (B, L, model_dim).  Returns LayerNorm(x + W2(relu(W1(x)))).

    use_bf16_matmul=True casts f32 weights (and the matmul copy of x) to bf16 for
    the MXU; residual + LayerNorm stay f32.  Deviates slightly from the f32
    PyTorch reference -- only enable if the accuracy budget allows.
    """
    B, L, D = x.shape
    F = w1.shape[1]
    rows = B * L

    # Lane-dense padding: model_dim / ffn_dim up to multiples of 128.
    D_pad = _round_up(D, 128)
    F_pad = _round_up(F, 128)
    mask_lanes = (D_pad != D)

    x_bytes = x.dtype.itemsize
    w_dtype = jnp.bfloat16 if (use_bf16_matmul and w1.dtype == jnp.float32) else w1.dtype
    w_bytes = jnp.dtype(w_dtype).itemsize

    # Per-generation VMEM budget (with headroom for compiler-internal scratch).
    cap = _vmem_capacity_bytes()
    tile_budget = int(cap * 0.55)          # what tiles are sized against
    vmem_limit = int(cap * 0.80)           # what the compiler is allowed to use

    row_tile, fc, resident = _select_tiling(rows, D_pad, F_pad, x_bytes, w_bytes,
                                            tile_budget)
    rows_pad = _round_up(rows, row_tile)

    # Pad only when needed (avoids extra HBM passes when shapes are aligned).
    x2 = _pad_to(x.reshape(rows, D), (rows_pad, D_pad))
    w1_p = _pad_to(w1, (D_pad, F_pad)).astype(w_dtype)
    w2_p = _pad_to(w2, (F_pad, D_pad)).astype(w_dtype)
    b1_p = _pad_to(b1.reshape(1, F), (1, F_pad))
    # b2 / gamma / beta folded into one (3, D_pad) operand: one DMA stream.
    lnp = _pad_to(jnp.stack([b2, gamma, beta], axis=0), (3, D_pad))

    kernel = functools.partial(
        ffn_ln_resident_kernel if resident else ffn_ln_chunked_kernel,
        d_real=D, mask_lanes=mask_lanes)

    if resident:
        grid = (rows_pad // row_tile,)
        in_specs = [
            pl.BlockSpec((row_tile, D_pad), lambda i: (i, 0)),   # x rows
            pl.BlockSpec((D_pad, F_pad), lambda i: (0, 0)),      # W1 (resident)
            pl.BlockSpec((1, F_pad), lambda i: (0, 0)),          # b1
            pl.BlockSpec((F_pad, D_pad), lambda i: (0, 0)),      # W2 (resident)
            pl.BlockSpec((3, D_pad), lambda i: (0, 0)),          # b2 / gamma / beta
        ]
        out_specs = pl.BlockSpec((row_tile, D_pad), lambda i: (i, 0))
        scratch_shapes = []
        dim_sem = ("parallel",)
    else:
        grid = (rows_pad // row_tile, F_pad // fc)
        in_specs = [
            pl.BlockSpec((row_tile, D_pad), lambda i, k: (i, 0)),  # x rows
            pl.BlockSpec((D_pad, fc), lambda i, k: (0, k)),        # W1 chunk
            pl.BlockSpec((1, fc), lambda i, k: (0, k)),            # b1 chunk
            pl.BlockSpec((fc, D_pad), lambda i, k: (k, 0)),        # W2 chunk
            pl.BlockSpec((3, D_pad), lambda i, k: (0, 0)),         # b2 / gamma / beta
        ]
        out_specs = pl.BlockSpec((row_tile, D_pad), lambda i, k: (i, 0))
        scratch_shapes = [pltpu.VMEM((row_tile, D_pad), jnp.float32)]
        dim_sem = ("parallel", "arbitrary")

    # Dtype-aware cost estimate incl. actual weight re-stream count (advisory).
    n_row_tiles = rows_pad // row_tile
    weight_bytes = 2 * D_pad * F_pad * w_bytes
    flops = 4 * rows_pad * D_pad * F_pad
    bytes_accessed = (2 * rows_pad * D_pad * x_bytes
                      + (1 if resident else n_row_tiles) * weight_bytes
                      + 4 * (F_pad + 3 * D_pad))
    cost = pl.CostEstimate(flops=flops, transcendentals=rows_pad,
                           bytes_accessed=bytes_accessed)

    out = pl.pallas_call(
        kernel,
        out_shape=jax.ShapeDtypeStruct((rows_pad, D_pad), x.dtype),
        grid_spec=pltpu.PrefetchScalarGridSpec(
            num_scalar_prefetch=0,
            grid=grid,
            in_specs=in_specs,
            out_specs=out_specs,
            scratch_shapes=scratch_shapes,
        ),
        compiler_params=pltpu.CompilerParams(
            dimension_semantics=dim_sem,
            vmem_limit_bytes=vmem_limit,
        ),
        cost_estimate=cost,
    )(x2, w1_p, b1_p, w2_p, lnp)

    if rows_pad != rows or D_pad != D:
        out = out[:rows, :D]
    return out.reshape(B, L, D)


def reference(x, w1, b1, w2, b2, gamma, beta):
    h = jnp.maximum(jnp.einsum("bld,df->blf", x, w1) + b1, 0.0)
    y = jnp.einsum("blf,fd->bld", h, w2) + b2
    r = x + y
    mean = jnp.mean(r, axis=-1, keepdims=True)
    var = jnp.mean((r - mean) ** 2, axis=-1, keepdims=True)
    return (r - mean) / jnp.sqrt(var + LN_EPS) * gamma + beta


if __name__ == "__main__":
    # Small shapes: batch=2, seq=8, model_dim=32, ffn_dim=64
    B, L, D, F = 2, 8, 32, 64

    key = jax.random.PRNGKey(0)
    kx, k1, kb1, k2, kb2 = jax.random.split(key, 5)

    x = jax.random.normal(kx, (B, L, D), dtype=jnp.float32)

    # Conv1d weight (out, in, 1) stored transposed as (in, out)
    w1 = jax.random.normal(k1, (D, F), dtype=jnp.float32) * 0.1   # model_dim -> ffn_dim
    b1 = jax.random.normal(kb1, (F,), dtype=jnp.float32) * 0.1
    w2 = jax.random.normal(k2, (F, D), dtype=jnp.float32) * 0.1   # ffn_dim -> model_dim
    b2 = jax.random.normal(kb2, (D,), dtype=jnp.float32) * 0.1
    gamma = jnp.ones((D,), dtype=jnp.float32)
    beta = jnp.zeros((D,), dtype=jnp.float32)

    ref = reference(x, w1, b1, w2, b2, gamma, beta)

    # Exact-precision path (matches the f32 PyTorch module).
    out = positional_wise_ffn(x, w1, b1, w2, b2, gamma, beta)
    out = jax.block_until_ready(out)
    assert out.shape == (B, L, D)
    assert jnp.allclose(out, ref, atol=1e-5, rtol=1e-5), "mismatch vs reference (f32 path)"

    # Optional bf16-on-MXU path (looser tolerance; intentional precision trade-off).
    out_bf16 = positional_wise_ffn(x, w1, b1, w2, b2, gamma, beta, use_bf16_matmul=True)
    out_bf16 = jax.block_until_ready(out_bf16)
    assert out_bf16.shape == (B, L, D)
    assert bool(jnp.all(jnp.isfinite(out_bf16)))
    assert jnp.allclose(out_bf16, ref, atol=1e-1, rtol=1e-1), "mismatch vs reference (bf16 path)"

    print("KERNEL_OK")
</pallas_src>

<mosaic_0001>
module attributes {stable_mosaic.version = 11 : i64} {
  func.func @ffn_ln_resident_kernel(%arg0: i32, %arg1: memref<16x128xf32, #tpu.memory_space<vmem>>, %arg2: memref<128x128xf32, #tpu.memory_space<vmem>>, %arg3: memref<1x128xf32, #tpu.memory_space<vmem>>, %arg4: memref<128x128xf32, #tpu.memory_space<vmem>>, %arg5: memref<3x128xf32, #tpu.memory_space<vmem>>, %arg6: memref<16x128xf32, #tpu.memory_space<vmem>>) attributes {dimension_semantics = [#tpu.dimension_semantics<parallel>], iteration_bounds = array<i64: 1>, scalar_prefetch = 0 : i64, scratch_operands = 0 : i64, tpu.core_type = #tpu.core_type<tc>, window_params = [{transform_indices = @transform_0, window_bounds = array<i64: 16, 128>}, {pipeline_mode = #tpu.pipeline_mode<synchronous>, transform_indices = @transform_1, window_bounds = array<i64: 128, 128>}, {pipeline_mode = #tpu.pipeline_mode<synchronous>, transform_indices = @transform_2, window_bounds = array<i64: 1, 128>}, {pipeline_mode = #tpu.pipeline_mode<synchronous>, transform_indices = @transform_3, window_bounds = array<i64: 128, 128>}, {pipeline_mode = #tpu.pipeline_mode<synchronous>, transform_indices = @transform_4, window_bounds = array<i64: 3, 128>}, {transform_indices = @transform_5, window_bounds = array<i64: 16, 128>}]} {
    %c0 = arith.constant 0 : index
    %c0_0 = arith.constant 0 : index
    %0 = vector.load %arg1[%c0, %c0_0] : memref<16x128xf32, #tpu.memory_space<vmem>>, vector<16x128xf32>
    %c0_1 = arith.constant 0 : index
    %c0_2 = arith.constant 0 : index
    %1 = vector.load %arg2[%c0_1, %c0_2] : memref<128x128xf32, #tpu.memory_space<vmem>>, vector<128x128xf32>
    %cst = arith.constant dense<0.000000e+00> : vector<16x128xf32>
    %2 = tpu.matmul %0, %1, %cst {dimension_numbers = #tpu.dot_dimension_numbers<[1], [0], [0], [1], [0, 0, 1, 1], [], []>} : vector<16x128xf32>, vector<128x128xf32>, vector<16x128xf32> -> vector<16x128xf32>
    %c0_3 = arith.constant 0 : index
    %c0_4 = arith.constant 0 : index
    %3 = vector.load %arg3[%c0_3, %c0_4] : memref<1x128xf32, #tpu.memory_space<vmem>>, vector<1x128xf32>
    %4 = vector.broadcast %3 : vector<1x128xf32> to vector<16x128xf32>
    %5 = arith.addf %2, %4 : vector<16x128xf32>
    %cst_5 = arith.constant 0.000000e+00 : f32
    %6 = vector.broadcast %cst_5 : f32 to vector<16x128xf32>
    %7 = arith.maximumf %5, %6 : vector<16x128xf32>
    %c0_6 = arith.constant 0 : index
    %c0_7 = arith.constant 0 : index
    %8 = vector.load %arg4[%c0_6, %c0_7] : memref<128x128xf32, #tpu.memory_space<vmem>>, vector<128x128xf32>
    %cst_8 = arith.constant dense<0.000000e+00> : vector<16x128xf32>
    %9 = tpu.matmul %7, %8, %cst_8 {dimension_numbers = #tpu.dot_dimension_numbers<[1], [0], [0], [1], [0, 0, 1, 1], [], []>} : vector<16x128xf32>, vector<128x128xf32>, vector<16x128xf32> -> vector<16x128xf32>
    %10 = arith.addf %0, %9 : vector<16x128xf32>
    %c0_9 = arith.constant 0 : index
    %c0_10 = arith.constant 0 : index
    %11 = vector.load %arg5[%c0_9, %c0_10] : memref<3x128xf32, #tpu.memory_space<vmem>>, vector<1x128xf32>
    %12 = vector.broadcast %11 : vector<1x128xf32> to vector<16x128xf32>
    %13 = arith.addf %10, %12 : vector<16x128xf32>
    %c0_11 = arith.constant 0 : index
    %c0_12 = arith.constant 0 : index
    %14 = vector.load %arg5[%c0_11, %c0_12] : memref<3x128xf32, #tpu.memory_space<vmem>>, vector<3x128xf32>
    %cst_13 = arith.constant dense<0.000000e+00> : vector<16xf32>
    %15 = vector.multi_reduction <add>, %13, %cst_13 [1] : vector<16x128xf32> to vector<16xf32>
    %16 = vector.shape_cast %15 : vector<16xf32> to vector<16x1xf32>
    %cst_14 = arith.constant 3.125000e-02 : f32
    %17 = vector.broadcast %cst_14 : f32 to vector<16x1xf32>
    %18 = arith.mulf %16, %17 : vector<16x1xf32>
    %19 = vector.broadcast %18 : vector<16x1xf32> to vector<16x128xf32>
    %20 = arith.subf %13, %19 : vector<16x128xf32>
    %21 = tpu.iota {dimensions = array<i32: 1>} : vector<16x128xi32>
    %c32_i32 = arith.constant 32 : i32
    %22 = vector.broadcast %c32_i32 : i32 to vector<16x128xi32>
    %23 = arith.cmpi slt, %21, %22 : vector<16x128xi32>
    %cst_15 = arith.constant 0.000000e+00 : f32
    %24 = vector.broadcast %cst_15 : f32 to vector<16x128xf32>
    %25 = arith.select %23, %20, %24 : vector<16x128xi1>, vector<16x128xf32>
    %26 = arith.mulf %25, %25 : vector<16x128xf32>
    %cst_16 = arith.constant dense<0.000000e+00> : vector<16xf32>
    %27 = vector.multi_reduction <add>, %26, %cst_16 [1] : vector<16x128xf32> to vector<16xf32>
    %28 = vector.shape_cast %27 : vector<16xf32> to vector<16x1xf32>
    %cst_17 = arith.constant 3.125000e-02 : f32
    %29 = vector.broadcast %cst_17 : f32 to vector<16x1xf32>
    %30 = arith.mulf %28, %29 : vector<16x1xf32>
    %cst_18 = arith.constant 9.99999974E-6 : f32
    %31 = vector.broadcast %cst_18 : f32 to vector<16x1xf32>
    %32 = arith.addf %30, %31 : vector<16x1xf32>
    %33 = math.rsqrt %32 : vector<16x1xf32>
    %34 = vector.broadcast %33 : vector<16x1xf32> to vector<16x128xf32>
    %35 = arith.mulf %25, %34 : vector<16x128xf32>
    %36 = vector.extract_strided_slice %14 {offsets = [1, 0], sizes = [1, 128], strides = [1, 1]} : vector<3x128xf32> to vector<1x128xf32>
    %37 = vector.broadcast %36 : vector<1x128xf32> to vector<16x128xf32>
    %38 = arith.mulf %35, %37 : vector<16x128xf32>
    %39 = vector.extract_strided_slice %14 {offsets = [2, 0], sizes = [1, 128], strides = [1, 1]} : vector<3x128xf32> to vector<1x128xf32>
    %40 = vector.broadcast %39 : vector<1x128xf32> to vector<16x128xf32>
    %41 = arith.addf %38, %40 : vector<16x128xf32>
    %c0_19 = arith.constant 0 : index
    %c0_20 = arith.constant 0 : index
    %42 = vector.load %arg6[%c0_19, %c0_20] : memref<16x128xf32, #tpu.memory_space<vmem>>, vector<16x128xf32>
    tpu.vector_store %arg6[%c0_19, %c0_20], %41 {strides = array<i32>} : memref<16x128xf32, #tpu.memory_space<vmem>>, vector<16x128xf32>,
    return
  }
  func.func @transform_0(%arg0: i32) -> (i32, i32) {
    %c0_i32 = arith.constant 0 : i32
    %c0_i32_0 = arith.constant 0 : i32
    return %arg0, %c0_i32 : i32, i32
  }
  func.func @transform_1(%arg0: i32) -> (i32, i32) {
    %c0_i32 = arith.constant 0 : i32
    %c0_i32_0 = arith.constant 0 : i32
    %c0_i32_1 = arith.constant 0 : i32
    return %c0_i32, %c0_i32_0 : i32, i32
  }
  func.func @transform_2(%arg0: i32) -> (i32, i32) {
    %c0_i32 = arith.constant 0 : i32
    %c0_i32_0 = arith.constant 0 : i32
    %c0_i32_1 = arith.constant 0 : i32
    return %c0_i32, %c0_i32_0 : i32, i32
  }
  func.func @transform_3(%arg0: i32) -> (i32, i32) {
    %c0_i32 = arith.constant 0 : i32
    %c0_i32_0 = arith.constant 0 : i32
    %c0_i32_1 = arith.constant 0 : i32
    return %c0_i32, %c0_i32_0 : i32, i32
  }
  func.func @transform_4(%arg0: i32) -> (i32, i32) {
    %c0_i32 = arith.constant 0 : i32
    %c0_i32_0 = arith.constant 0 : i32
    %c0_i32_1 = arith.constant 0 : i32
    return %c0_i32, %c0_i32_0 : i32, i32
  }
  func.func @transform_5(%arg0: i32) -> (i32, i32) {
    %c0_i32 = arith.constant 0 : i32
    %c0_i32_0 = arith.constant 0 : i32
    return %arg0, %c0_i32 : i32, i32
  }
}

</mosaic_0001>

<bundles_post_ra>
// kernel: positional_wise_ffn.1
= control target key start
LH: loop header
LB: loop body
LE: loop exit
PB: predicated region body
PF: predicated region fallthrough
CT: control target
= control target key end

     0   :  { %v231_v48 = vlaneseq  ;;  %s531_s1 = inlined_call_operand.vmem [shape: f32[128,128], index: 1, kind: input, shape index: {}]   ;;  %s532_s0 = inlined_call_operand.vmem [shape: f32[16,128], index: 0, kind: input, shape index: {}]   ;;  %s533_s3 = inlined_call_operand.vmem [shape: f32[128,128], index: 3, kind: input, shape index: {}]   ;;  %s534_s2 = inlined_call_operand.vmem [shape: f32[1,128], index: 2, kind: input, shape index: {}]   ;;  %s535_s4 = inlined_call_operand.vmem [shape: f32[3,128], index: 4, kind: input, shape index: {}]   ;;  %s536_s5 = inlined_call_operand.vmem [shape: f32[16,128], index: 5, kind: output, shape index: {}]  }
   0x1   :  { %v37_v0 = vld [vmem:[%s531_s1 + $0x78] sm:$0xff]  ;;  %v36_v1 = vld [vmem:[%s531_s1 + $0x70] sm:$0xff]  ;;  %v35_v2 = vld [vmem:[%s531_s1 + $0x68] sm:$0xff] }
   0x2   :  { %306 = vmatprep.subr.mxu0 %v37_v0  ;;  %v34_v3 = vld [vmem:[%s531_s1 + $0x60] sm:$0xff]  ;;  %v33_v5 = vld [vmem:[%s531_s1 + $0x58] sm:$0xff]  ;;  %v136_v7 = vld [vmem:[%s533_s3 + $0x70] sm:$0xff]  ;;  %v251_v49 = vshrl.u32 %v231_v48, 7  ;;  %v232_v55 = vand.u32 127, %v231_v48 }
   0x3   :  { %307 = vmatpush3.msra.mxu0 %v37_v0  ;;  %v425_v4 = vld [vmem:[%s532_s0] sm:$0xff]  ;;  %v137_v6 = vld [vmem:[%s533_s3 + $0x78] sm:$0xff]  ;;  %v32_v8 = vld [vmem:[%s531_s1 + $0x50] sm:$0xff] }
   0x4   :  { %308 = vmatprep.subr.mxu0 %v36_v1  ;;  %338 = vmatprep.mubr.f32.mxu0 %v425_v4  ;;  %v135_v9 = vld [vmem:[%s533_s3 + $0x68] sm:$0xff]  ;;  %v134_v11 = vld [vmem:[%s533_s3 + $0x60] sm:$0xff]  ;;  %v133_v13 = vld [vmem:[%s533_s3 + $0x58] sm:$0xff]  ;;  %v252_v51 = vsub.s32 1, %v251_v49  ;;  %v258_v52 = vsub.s32 2, %v251_v49  ;;  %vm233_vm0 = vcmp.lt.s32.totalorder %v232_v55, 32 }
   0x5   :  { %309 = vmatpush3.msra.mxu0 %v36_v1  ;;  %341 = vmatprep.subr.mxu1 %v137_v6  ;;  %v31_v10 = vld [vmem:[%s531_s1 + $0x48] sm:$0xff]  ;;  %v30_v12 = vld [vmem:[%s531_s1 + $0x40] sm:$0xff]  ;;  %v29_v14 = vld [vmem:[%s531_s1 + $0x38] sm:$0xff] }
   0x6   :  { %310 = vmatprep.subr.mxu0 %v35_v2  ;;  %342 = vmatpush3.msra.mxu1 %v137_v6  ;;  %v132_v15 = vld [vmem:[%s533_s3 + $0x50] sm:$0xff]  ;;  %v131_v17 = vld [vmem:[%s533_s3 + $0x48] sm:$0xff]  ;;  %v130_v19 = vld [vmem:[%s533_s3 + $0x40] sm:$0xff] }
   0x7   :  { %311 = vmatpush3.msra.mxu0 %v35_v2  ;;  %343 = vmatprep.subr.mxu1 %v136_v7  ;;  %v28_v16 = vld [vmem:[%s531_s1 + $0x30] sm:$0xff]  ;;  %v27_v18 = vld [vmem:[%s531_s1 + $0x28] sm:$0xff]  ;;  %v26_v20 = vld [vmem:[%s531_s1 + $0x20] sm:$0xff] }
   0x8   :  { %312 = vmatprep.subr.mxu0 %v34_v3  ;;  %344 = vmatpush3.msra.mxu1 %v136_v7  ;;  %v129_v21 = vld [vmem:[%s533_s3 + $0x38] sm:$0xff]  ;;  %v128_v23 = vld [vmem:[%s533_s3 + $0x30] sm:$0xff]  ;;  %v127_v25 = vld [vmem:[%s533_s3 + $0x28] sm:$0xff] }
   0x9   :  { %313 = vmatpush3.msra.mxu0 %v34_v3  ;;  %345 = vmatprep.subr.mxu1 %v135_v9  ;;  %v25_v22 = vld [vmem:[%s531_s1 + $0x18] sm:$0xff]  ;;  %v24_v24 = vld [vmem:[%s531_s1 + $0x10] sm:$0xff]  ;;  %v23_v26 = vld [vmem:[%s531_s1 + $0x8] sm:$0xff] }
   0xa   :  { %314 = vmatprep.subr.mxu0 %v33_v5  ;;  %346 = vmatpush3.msra.mxu1 %v135_v9  ;;  %v126_v27 = vld [vmem:[%s533_s3 + $0x20] sm:$0xff]  ;;  %v21_v29 = vld [vmem:[%s532_s0 + $0x8] sm:$0xff]  ;;  %v125_v30 = vld [vmem:[%s533_s3 + $0x18] sm:$0xff] }
   0xb   :  { %315 = vmatpush3.msra.mxu0 %v33_v5  ;;  %347 = vmatprep.subr.mxu1 %v134_v11  ;;  %v22_v28 = vld [vmem:[%s531_s1] sm:$0xff]  ;;  %v124_v31 = vld [vmem:[%s533_s3 + $0x10] sm:$0xff]  ;;  %v123_v32 = vld [vmem:[%s533_s3 + $0x8] sm:$0xff] }
   0xc   :  { %316 = vmatprep.subr.mxu0 %v32_v8  ;;  %348 = vmatpush3.msra.mxu1 %v134_v11  ;;  %v122_v33 = vld [vmem:[%s533_s3] sm:$0xff] }
   0xd   :  { %317 = vmatpush3.msra.mxu0 %v32_v8  ;;  %349 = vmatprep.subr.mxu1 %v133_v13  ;;  %v268_v34 = vld [vmem:[%s534_s2] ss:$0 sm:$0xff] }
   0xe   :  { %318 = vmatprep.subr.mxu0 %v31_v10  ;;  %350 = vmatpush3.msra.mxu1 %v133_v13  ;;  %v269_v44 = vld [vmem:[%s535_s4] ss:$0 sm:$0xff] }
   0xf   :  { %319 = vmatpush3.msra.mxu0 %v31_v10  ;;  %351 = vmatprep.subr.mxu1 %v132_v15  ;;  %v222_v50 = vld [vmem:[%s535_s4] sm:$0x7] }
  0x10   :  { %320 = vmatprep.subr.mxu0 %v30_v12  ;;  %352 = vmatpush3.msra.mxu1 %v132_v15  ;;  %v253_v53 = vrot.slane %v222_v50, %v252_v51  ;;  %v259_v54 = vrot.slane %v222_v50, %v258_v52 }
  0x11   :  { %321 = vmatpush3.msra.mxu0 %v30_v12  ;;  %353 = vmatprep.subr.mxu1 %v131_v17 }
  0x12   :  { %322 = vmatprep.subr.mxu0 %v29_v14  ;;  %354 = vmatpush3.msra.mxu1 %v131_v17 }
  0x13   :  { %323 = vmatpush3.msra.mxu0 %v29_v14  ;;  %355 = vmatprep.subr.mxu1 %v130_v19 }
  0x14   :  { %324 = vmatprep.subr.mxu0 %v28_v16  ;;  %356 = vmatpush3.msra.mxu1 %v130_v19 }
  0x15   :  { %325 = vmatpush3.msra.mxu0 %v28_v16  ;;  %357 = vmatprep.subr.mxu1 %v129_v21 }
  0x16   :  { %326 = vmatprep.subr.mxu0 %v27_v18  ;;  %358 = vmatpush3.msra.mxu1 %v129_v21 }
  0x17   :  { %327 = vmatpush3.msra.mxu0 %v27_v18  ;;  %359 = vmatprep.subr.mxu1 %v128_v23 }
  0x18   :  { %328 = vmatprep.subr.mxu0 %v26_v20  ;;  %360 = vmatpush3.msra.mxu1 %v128_v23 }
  0x19   :  { %329 = vmatpush3.msra.mxu0 %v26_v20  ;;  %361 = vmatprep.subr.mxu1 %v127_v25 }
  0x1a   :  { %330 = vmatprep.subr.mxu0 %v25_v22  ;;  %362 = vmatpush3.msra.mxu1 %v127_v25 }
  0x1b   :  { %331 = vmatpush3.msra.mxu0 %v25_v22  ;;  %363 = vmatprep.subr.mxu1 %v126_v27 }
  0x1c   :  { %332 = vmatprep.subr.mxu0 %v24_v24  ;;  %364 = vmatpush3.msra.mxu1 %v126_v27 }
  0x1d   :  { %333 = vmatpush3.msra.mxu0 %v24_v24  ;;  %365 = vmatprep.subr.mxu1 %v125_v30 }
  0x1e   :  { %334 = vmatprep.subr.mxu0 %v23_v26  ;;  %366 = vmatpush3.msra.mxu1 %v125_v30 }
  0x1f   :  { %335 = vmatpush3.msra.mxu0 %v23_v26  ;;  %367 = vmatprep.subr.mxu1 %v124_v31 }
  0x20   :  { %336 = vmatprep.subr.mxu0 %v22_v28  ;;  %368 = vmatpush3.msra.mxu1 %v124_v31 }
  0x21   :  { %337 = vmatpush3.msra.mxu0 %v22_v28  ;;  %369 = vmatprep.subr.mxu1 %v123_v32 }
  0x22   :  { %339 = vmatmul.mubr.f32.vlgmr.msra.gmra.mxu0 %v21_v29  ;;  %370 = vmatpush3.msra.mxu1 %v123_v32 }
  0x23   :  { %371 = vmatprep.subr.mxu1 %v122_v33 }
  0x24   :  { %372 = vmatpush3.msra.mxu1 %v122_v33 }
  0xe2   :  { %v340_v35 = vpop.f32.mrf.mxu0 }
  0xe3   :  { %v117_v36 = vadd.f32 %v340_v35, %v268_v34 }
  0xe4   :  { %v111_v37 = vpop.f32.mrf.mxu0 }
  0xe5   :  { %v112_v38 = vadd.f32 %v268_v34, %v111_v37  ;;  %v121_v40 = vmax.f32 %v117_v36, 0.0 }
  0xe7   :  { %v120_v39 = vmax.f32 %v112_v38, 0.0 }
  0xe9   :  { %373 = vmatprep.mubr.f32.mxu1 %v120_v39 }
  0xea   :  { %374 = vmatmul.mubr.f32.vlgmr.msra.gmra.mxu1 %v121_v40 }
 0x1aa   :  { %v375_v41 = vpop.f32.mrf.mxu1 }
 0x1ab   :  { %v214_v45 = vadd.f32 %v375_v41, %v21_v29 }
 0x1ac   :  { %v204_v42 = vpop.f32.mrf.mxu1 }
 0x1ad   :  { %v213_v43 = vadd.f32 %v204_v42, %v425_v4  ;;  %v221_v47 = vadd.f32 %v269_v44, %v214_v45 }
 0x1af   :  { %v220_v46 = vadd.f32 %v269_v44, %v213_v43 }
 0x1b1   :  { %223 = vadd.xlane.f32.xlu0 %v220_v46 }
 0x1b5   :  { %225 = vadd.xlane.f32.xlu0 %v221_v47 }
 0x23a   :  { %v224_v56 = vpop.xlane.xlu0 %223 }
 0x23b   :  { %v227_v57 = vmul.f32 0.03125, %v224_v56 }
 0x23d   :  { %v229_v58 = vsub.f32 %v220_v46, %v227_v57 }
 0x23e   :  { %v226_v59 = vpop.xlane.xlu0 %225 }
 0x23f   :  { %v228_v60 = vmul.f32 0.03125, %v226_v59  ;;  %v234_v61 = vsel %vm233_vm0, %v229_v58, 0.0 }
 0x240   :  { %v236_v62 = vmul.f32 %v234_v61, %v234_v61 }
 0x241   :  { %v230_v63 = vsub.f32 %v221_v47, %v228_v60 }
 0x242   :  { %238 = vadd.xlane.f32.xlu1 %v236_v62 }
 0x243   :  { %v235_v0 = vsel %vm233_vm0, %v230_v63, 0.0 }
 0x244   :  { %v237_v1 = vmul.f32 %v235_v0, %v235_v0 }
 0x246   :  { %240 = vadd.xlane.f32.xlu1 %v237_v1 }
 0x2cb   :  { %v239_v2 = vpop.xlane.xlu1 %238 }
 0x2cc   :  { %v242_v3 = vmul.f32 0.03125, %v239_v2 }
 0x2ce   :  { %v244_v4 = vadd.f32 1e-05, %v242_v3 }
 0x2cf   :  { %v241_v5 = vpop.xlane.xlu1 %240 }
 0x2d0   :  { %376 = vrsqrt.f32 %v244_v4  ;;  %v243_v6 = vmul.f32 0.03125, %v241_v5 }
 0x2d2   :  { %v245_v7 = vadd.f32 1e-05, %v243_v6 }
 0x2d4   :  { %378 = vrsqrt.f32 %v245_v7 }
 0x2dd   :  { %v377_v8 = vpop.eup %376 }
 0x2de   :  { %v248_v9 = vmul.f32 %v377_v8, %v234_v61 }
 0x2e0   :  { %v254_v10 = vmul.f32 %v253_v53, %v248_v9 }
 0x2e1   :  { %v379_v11 = vpop.eup %378 }
 0x2e2   :  { %v260_v12 = vadd.f32 %v259_v54, %v254_v10  ;;  %v249_v13 = vmul.f32 %v379_v11, %v235_v0 }
 0x2e4   :  { %262 = vst [vmem:[%s536_s5] sm:$0xff] %v260_v12  ;;  %v255_v14 = vmul.f32 %v253_v53, %v249_v13 }
 0x2e6   :  { %v261_v15 = vadd.f32 %v259_v54, %v255_v14 }
 0x2e8   :  { %263 = vst [vmem:[%s536_s5 + $0x8] sm:$0xff] %v261_v15 }

</bundles_post_ra>
